<compile_context>
chip_gen: v6e
topology: v6e:2x2x1
jax: 0.10.0
libtpu: 0.0.40
codegen_flags: <defaults>
</compile_context>

<pallas_src>
import jax
import jax.numpy as jnp
from jax.experimental import pallas as pl
from jax.experimental.pallas import tpu as pltpu


_MAX_BLOCK_BATCH = 16  # cap images/grid-step (bounds the unrolled rescale loop)


# --------------------------------------------------------------------------
# Fused single-pass kernel: block = (Nb, C, HW), NCHW-native layout.
# --------------------------------------------------------------------------
def se_kernel(x_ref, w1_ref, b1_ref, w2_ref, b2_ref, o_ref):
    nb, c, hw = x_ref.shape
    inv_hw = 1.0 / float(hw)

    # Squeeze: global average pool over HW (lane reduce), f32 accumulation
    # without an explicit full-block astype.
    s = jnp.sum(x_ref[...], axis=-1, dtype=jnp.float32) * inv_hw        # (Nb, C)

    # Excite, transposed so the gate ends up with C on sublanes:
    #   h_t = relu(W1 @ s^T + b1)   : (Cr, Nb)   (contraction over lanes of both)
    #   g_t = sigmoid(W2 @ h_t + b2): (C,  Nb)
    h_t = jax.lax.dot_general(
        w1_ref[...], s, (((1,), (1,)), ((), ())),
        preferred_element_type=jnp.float32) + b1_ref[...]
    h_t = jnp.maximum(h_t, 0.0)
    g_t = jax.lax.dot_general(
        w2_ref[...], h_t, (((1,), (0,)), ((), ())),
        preferred_element_type=jnp.float32) + b2_ref[...]
    g_t = jax.nn.sigmoid(g_t)
    g_t = g_t.astype(o_ref.dtype)        # single hoisted downcast

    # Rescale: per-image gate column (C, 1) broadcast along lanes (HW).
    for i in range(nb):                   # static unroll, nb <= _MAX_BLOCK_BATCH
        o_ref[i] = x_ref[i] * g_t[:, i:i + 1]


# --------------------------------------------------------------------------
# Rescale-only kernel for the two-pass (HW-tiled) fallback.
# --------------------------------------------------------------------------
def se_scale_kernel(x_ref, g_ref, o_ref):
    # x_ref: (1, C, T_HW); g_ref: (1, C, 1) -> broadcast along lanes.
    o_ref[...] = x_ref[...] * g_ref[...].astype(o_ref.dtype)


# --------------------------------------------------------------------------
# Generation-aware sizing helpers.
# --------------------------------------------------------------------------
def _tpu_vmem_and_cores():
    vmem_cap = 64 << 20          # conservative default (v7x per-core VMEM)
    kind = ""
    try:
        info = pltpu.get_tpu_info()
        v = getattr(info, "vmem_capacity_bytes", None)
        if v:
            vmem_cap = int(v)
    except Exception:
        pass
    try:
        kind = jax.devices()[0].device_kind.lower()
    except Exception:
        pass
    if kind:
        two_cores = "v7" in kind          # only v7x has 2 TensorCores per chip
    else:
        two_cores = vmem_cap <= (64 << 20)
    return vmem_cap, two_cores


def _pick_block_batch(N, per_image_bytes, block_budget, two_cores):
    """Largest images-per-step whose double-buffered in+out blocks fit the
    budget; on 2-TC chips prefer an even number of grid steps."""
    if 4 * per_image_bytes > block_budget:
        return None                       # per-image block too big -> two-pass
    cap = max(min(block_budget // (4 * per_image_bytes), _MAX_BLOCK_BATCH, N), 1)
    divisors = [d for d in range(1, N + 1) if N % d == 0 and d <= cap]
    if two_cores and N >= 2:
        even = [d for d in divisors if (N // d) % 2 == 0]
        if even:
            return max(even)
    return max(divisors)
    # TODO(synk): use a cdiv grid with a masked tail so prime/awkward N does not
    # silently degrade to Nb=1.


# --------------------------------------------------------------------------
# Wrapper.
# --------------------------------------------------------------------------
def se_forward(x_nchw, w1, b1, w2, b2, *, block_batch=None, hw_tile=None,
               force_two_pass=False):
    """x_nchw: (N, C, H, W); w1: (Cr, C); b1: (Cr,); w2: (C, Cr); b2: (C,)."""
    N, C, H, W = x_nchw.shape
    Cr = w1.shape[0]
    HW = H * W
    itemsize = jnp.dtype(x_nchw.dtype).itemsize

    x3 = x_nchw.reshape(N, C, HW)          # contiguous reshape: no data movement
    b1c = b1.reshape(Cr, 1)
    b2c = b2.reshape(C, 1)
    param_bytes = int(w1.size + w2.size + b1.size + b2.size) * 4

    vmem_cap, two_cores = _tpu_vmem_and_cores()
    block_budget = max(int(0.65 * vmem_cap) - param_bytes - (4 << 20), 8 << 20)
    per_image_bytes = C * HW * itemsize

    use_two_pass = force_two_pass
    if not use_two_pass:
        if block_batch is None:
            block_batch = _pick_block_batch(N, per_image_bytes, block_budget,
                                            two_cores)
            if block_batch is None:
                use_two_pass = True        # huge per-image maps (v7x VMEM)
            elif two_cores and N == 1 and HW >= 256:
                use_two_pass = True        # serving: split HW across both TCs

    # ---------------- Single-pass fused path (2*|x| HBM traffic) ------------
    if not use_two_pass:
        Nb = int(block_batch)
        assert N % Nb == 0, "block_batch must divide N"
        block_bytes = Nb * per_image_bytes
        vmem_bytes = 5 * block_bytes + 2 * param_bytes + (16 << 20)
        vmem_bytes = int(min(max(vmem_bytes, 32 << 20), int(0.85 * vmem_cap)))

        out3 = pl.pallas_call(
            se_kernel,
            out_shape=jax.ShapeDtypeStruct((N, C, HW), x_nchw.dtype),
            grid_spec=pltpu.PrefetchScalarGridSpec(
                num_scalar_prefetch=0,
                grid=(N // Nb,),
                in_specs=[
                    pl.BlockSpec((Nb, C, HW), lambda n: (n, 0, 0)),
                    pl.BlockSpec((Cr, C), lambda n: (0, 0)),
                    pl.BlockSpec((Cr, 1), lambda n: (0, 0)),
                    pl.BlockSpec((C, Cr), lambda n: (0, 0)),
                    pl.BlockSpec((C, 1), lambda n: (0, 0)),
                ],
                out_specs=pl.BlockSpec((Nb, C, HW), lambda n: (n, 0, 0)),
            ),
            compiler_params=pltpu.CompilerParams(
                dimension_semantics=("parallel",),
                vmem_limit_bytes=vmem_bytes),
        )(x3, w1, b1c, w2, b2c)
        return out3.reshape(N, C, H, W)

    # ---------------- Two-pass HW-tiled fallback (3*|x| traffic) ------------
    # Pass 1: squeeze + excite with a cheap XLA reduce (tiny gate tensor).
    s = jnp.mean(x3, axis=-1, dtype=jnp.float32)                        # (N, C)
    h = jnp.maximum(s @ w1.T + b1, 0.0)                                 # (N, Cr)
    g = jax.nn.sigmoid(h @ w2.T + b2)                                   # (N, C)
    g3 = g.astype(jnp.float32)[:, :, None]                              # (N, C, 1)

    # Pass 2: bandwidth-heavy rescale in Pallas, tiled over HW (lane-dense).
    if hw_tile is not None:
        t_hw = max((int(hw_tile) // 128) * 128, 128)
    else:
        max_thw = max(block_budget // (4 * C * itemsize), 128)
        t_hw = max((max_thw // 128) * 128, 128)
    t_hw = min(t_hw, pl.cdiv(HW, 128) * 128)
    grid_hw = pl.cdiv(HW, t_hw)

    block_bytes = C * t_hw * itemsize
    vmem_bytes = 5 * block_bytes + 2 * C * 4 + (16 << 20)
    vmem_bytes = int(min(max(vmem_bytes, 32 << 20), int(0.85 * vmem_cap)))

    out3 = pl.pallas_call(
        se_scale_kernel,
        out_shape=jax.ShapeDtypeStruct((N, C, HW), x_nchw.dtype),
        grid_spec=pltpu.PrefetchScalarGridSpec(
            num_scalar_prefetch=0,
            grid=(N, grid_hw),
            in_specs=[
                pl.BlockSpec((1, C, t_hw), lambda n, t: (n, 0, t)),
                pl.BlockSpec((1, C, 1), lambda n, t: (n, 0, 0)),
            ],
            out_specs=pl.BlockSpec((1, C, t_hw), lambda n, t: (n, 0, t)),
        ),
        compiler_params=pltpu.CompilerParams(
            dimension_semantics=("parallel", "parallel"),
            vmem_limit_bytes=vmem_bytes),
    )(x3, g3)
    return out3.reshape(N, C, H, W)


def se_reference(x_nchw, w1, b1, w2, b2):
    """Plain-JAX reference matching the PyTorch SE forward."""
    s = jnp.mean(x_nchw, axis=(2, 3))                        # (N, C)
    h = jnp.maximum(s @ w1.T + b1, 0.0)                      # (N, Cr)
    g = jax.nn.sigmoid(h @ w2.T + b2)                        # (N, C)
    return x_nchw * g[:, :, None, None]


if __name__ == "__main__":
    # Small shapes consistent with the module: N=2, C=4, H=W=16, reduction=2.
    N, C, H, W = 2, 4, 16, 16
    reduction = 2
    Cr = C // reduction

    key = jax.random.PRNGKey(0)
    kx, k1, k2, k3, k4 = jax.random.split(key, 5)

    x = jax.random.normal(kx, (N, C, H, W), dtype=jnp.float32)
    # 1x1-conv weights == dense matrices.
    w1 = jax.random.normal(k1, (Cr, C), dtype=jnp.float32) * 0.1
    b1 = jax.random.normal(k2, (Cr,), dtype=jnp.float32) * 0.1
    w2 = jax.random.normal(k3, (C, Cr), dtype=jnp.float32) * 0.1
    b2 = jax.random.normal(k4, (C,), dtype=jnp.float32) * 0.1

    ref = jax.block_until_ready(se_reference(x, w1, b1, w2, b2))

    # Main fused single-pass path.
    out = jax.block_until_ready(se_forward(x, w1, b1, w2, b2))
    assert out.shape == (N, C, H, W)
    assert jnp.allclose(out, ref, atol=1e-5, rtol=1e-5), "fused path mismatch"

    # Also exercise the two-pass HW-tiled fallback (v7x large-feature-map path).
    out2 = jax.block_until_ready(
        se_forward(x, w1, b1, w2, b2, force_two_pass=True, hw_tile=128))
    assert jnp.allclose(out2, ref, atol=1e-5, rtol=1e-5), "two-pass mismatch"

    print("KERNEL_OK")
</pallas_src>

<mosaic_0001>
module attributes {stable_mosaic.version = 11 : i64} {
  func.func @se_kernel(%arg0: i32, %arg1: memref<2x4x256xf32, #tpu.memory_space<vmem>>, %arg2: memref<2x4xf32, #tpu.memory_space<vmem>>, %arg3: memref<2x1xf32, #tpu.memory_space<vmem>>, %arg4: memref<4x2xf32, #tpu.memory_space<vmem>>, %arg5: memref<4x1xf32, #tpu.memory_space<vmem>>, %arg6: memref<2x4x256xf32, #tpu.memory_space<vmem>>) attributes {dimension_semantics = [#tpu.dimension_semantics<parallel>], iteration_bounds = array<i64: 1>, scalar_prefetch = 0 : i64, scratch_operands = 0 : i64, tpu.core_type = #tpu.core_type<tc>, window_params = [{transform_indices = @transform_0, window_bounds = array<i64: 2, 4, 256>}, {pipeline_mode = #tpu.pipeline_mode<synchronous>, transform_indices = @transform_1, window_bounds = array<i64: 2, 4>}, {pipeline_mode = #tpu.pipeline_mode<synchronous>, transform_indices = @transform_2, window_bounds = array<i64: 2, 1>}, {pipeline_mode = #tpu.pipeline_mode<synchronous>, transform_indices = @transform_3, window_bounds = array<i64: 4, 2>}, {pipeline_mode = #tpu.pipeline_mode<synchronous>, transform_indices = @transform_4, window_bounds = array<i64: 4, 1>}, {transform_indices = @transform_5, window_bounds = array<i64: 2, 4, 256>}]} {
    %c0 = arith.constant 0 : index
    %c0_0 = arith.constant 0 : index
    %c0_1 = arith.constant 0 : index
    %0 = vector.load %arg1[%c0, %c0_0, %c0_1] : memref<2x4x256xf32, #tpu.memory_space<vmem>>, vector<2x4x256xf32>
    %cst = arith.constant dense<0.000000e+00> : vector<2x4xf32>
    %1 = vector.multi_reduction <add>, %0, %cst [2] : vector<2x4x256xf32> to vector<2x4xf32>
    %cst_2 = arith.constant 3.906250e-03 : f32
    %2 = vector.broadcast %cst_2 : f32 to vector<2x4xf32>
    %3 = arith.mulf %1, %2 : vector<2x4xf32>
    %c0_3 = arith.constant 0 : index
    %c0_4 = arith.constant 0 : index
    %4 = vector.load %arg2[%c0_3, %c0_4] : memref<2x4xf32, #tpu.memory_space<vmem>>, vector<2x4xf32>
    %cst_5 = arith.constant dense<0.000000e+00> : vector<2x2xf32>
    %5 = tpu.matmul %4, %3, %cst_5 {dimension_numbers = #tpu.dot_dimension_numbers<[1], [1], [0], [0], [0, 0, 1, 0], [], []>} : vector<2x4xf32>, vector<2x4xf32>, vector<2x2xf32> -> vector<2x2xf32>
    %c0_6 = arith.constant 0 : index
    %c0_7 = arith.constant 0 : index
    %6 = vector.load %arg3[%c0_6, %c0_7] : memref<2x1xf32, #tpu.memory_space<vmem>>, vector<2x1xf32>
    %7 = vector.broadcast %6 : vector<2x1xf32> to vector<2x2xf32>
    %8 = arith.addf %5, %7 : vector<2x2xf32>
    %cst_8 = arith.constant 0.000000e+00 : f32
    %9 = vector.broadcast %cst_8 : f32 to vector<2x2xf32>
    %10 = arith.maximumf %8, %9 : vector<2x2xf32>
    %c0_9 = arith.constant 0 : index
    %c0_10 = arith.constant 0 : index
    %11 = vector.load %arg4[%c0_9, %c0_10] : memref<4x2xf32, #tpu.memory_space<vmem>>, vector<4x2xf32>
    %cst_11 = arith.constant dense<0.000000e+00> : vector<4x2xf32>
    %12 = tpu.matmul %11, %10, %cst_11 {dimension_numbers = #tpu.dot_dimension_numbers<[1], [0], [0], [1], [0, 0, 1, 1], [], []>} : vector<4x2xf32>, vector<2x2xf32>, vector<4x2xf32> -> vector<4x2xf32>
    %c0_12 = arith.constant 0 : index
    %c0_13 = arith.constant 0 : index
    %13 = vector.load %arg5[%c0_12, %c0_13] : memref<4x1xf32, #tpu.memory_space<vmem>>, vector<4x1xf32>
    %14 = vector.broadcast %13 : vector<4x1xf32> to vector<4x2xf32>
    %15 = arith.addf %12, %14 : vector<4x2xf32>
    %16 = arith.negf %15 : vector<4x2xf32>
    %17 = math.exp %16 : vector<4x2xf32>
    %cst_14 = arith.constant 1.000000e+00 : f32
    %18 = vector.broadcast %cst_14 : f32 to vector<4x2xf32>
    %19 = arith.addf %18, %17 : vector<4x2xf32>
    %20 = arith.divf %18, %19 : vector<4x2xf32>
    %c0_15 = arith.constant 0 : index
    %c0_16 = arith.constant 0 : index
    %c0_17 = arith.constant 0 : index
    %21 = vector.load %arg1[%c0_15, %c0_16, %c0_17] : memref<2x4x256xf32, #tpu.memory_space<vmem>>, vector<1x4x256xf32>
    %22 = vector.shape_cast %21 : vector<1x4x256xf32> to vector<4x256xf32>
    %23 = vector.extract_strided_slice %20 {offsets = [0, 0], sizes = [4, 1], strides = [1, 1]} : vector<4x2xf32> to vector<4x1xf32>
    %24 = vector.broadcast %23 : vector<4x1xf32> to vector<4x256xf32>
    %25 = arith.mulf %22, %24 : vector<4x256xf32>
    %c0_18 = arith.constant 0 : index
    %c0_19 = arith.constant 0 : index
    %c0_20 = arith.constant 0 : index
    %26 = vector.load %arg6[%c0_18, %c0_19, %c0_20] : memref<2x4x256xf32, #tpu.memory_space<vmem>>, vector<1x4x256xf32>
    %27 = vector.shape_cast %26 : vector<1x4x256xf32> to vector<4x256xf32>
    %28 = vector.shape_cast %25 : vector<4x256xf32> to vector<1x4x256xf32>
    tpu.vector_store %arg6[%c0_18, %c0_19, %c0_20], %28 {strides = array<i32>} : memref<2x4x256xf32, #tpu.memory_space<vmem>>, vector<1x4x256xf32>,
    %c1 = arith.constant 1 : index
    %c0_21 = arith.constant 0 : index
    %c0_22 = arith.constant 0 : index
    %29 = vector.load %arg1[%c1, %c0_21, %c0_22] : memref<2x4x256xf32, #tpu.memory_space<vmem>>, vector<1x4x256xf32>
    %30 = vector.shape_cast %29 : vector<1x4x256xf32> to vector<4x256xf32>
    %31 = vector.extract_strided_slice %20 {offsets = [0, 1], sizes = [4, 1], strides = [1, 1]} : vector<4x2xf32> to vector<4x1xf32>
    %32 = vector.broadcast %31 : vector<4x1xf32> to vector<4x256xf32>
    %33 = arith.mulf %30, %32 : vector<4x256xf32>
    %c1_23 = arith.constant 1 : index
    %c0_24 = arith.constant 0 : index
    %c0_25 = arith.constant 0 : index
    %34 = vector.load %arg6[%c1_23, %c0_24, %c0_25] : memref<2x4x256xf32, #tpu.memory_space<vmem>>, vector<1x4x256xf32>
    %35 = vector.shape_cast %34 : vector<1x4x256xf32> to vector<4x256xf32>
    %36 = vector.shape_cast %33 : vector<4x256xf32> to vector<1x4x256xf32>
    tpu.vector_store %arg6[%c1_23, %c0_24, %c0_25], %36 {strides = array<i32>} : memref<2x4x256xf32, #tpu.memory_space<vmem>>, vector<1x4x256xf32>,
    return
  }
  func.func @transform_0(%arg0: i32) -> (i32, i32, i32) {
    %c0_i32 = arith.constant 0 : i32
    %c0_i32_0 = arith.constant 0 : i32
    %c0_i32_1 = arith.constant 0 : i32
    return %arg0, %c0_i32, %c0_i32_0 : i32, i32, i32
  }
  func.func @transform_1(%arg0: i32) -> (i32, i32) {
    %c0_i32 = arith.constant 0 : i32
    %c0_i32_0 = arith.constant 0 : i32
    %c0_i32_1 = arith.constant 0 : i32
    return %c0_i32, %c0_i32_0 : i32, i32
  }
  func.func @transform_2(%arg0: i32) -> (i32, i32) {
    %c0_i32 = arith.constant 0 : i32
    %c0_i32_0 = arith.constant 0 : i32
    %c0_i32_1 = arith.constant 0 : i32
    return %c0_i32, %c0_i32_0 : i32, i32
  }
  func.func @transform_3(%arg0: i32) -> (i32, i32) {
    %c0_i32 = arith.constant 0 : i32
    %c0_i32_0 = arith.constant 0 : i32
    %c0_i32_1 = arith.constant 0 : i32
    return %c0_i32, %c0_i32_0 : i32, i32
  }
  func.func @transform_4(%arg0: i32) -> (i32, i32) {
    %c0_i32 = arith.constant 0 : i32
    %c0_i32_0 = arith.constant 0 : i32
    %c0_i32_1 = arith.constant 0 : i32
    return %c0_i32, %c0_i32_0 : i32, i32
  }
  func.func @transform_5(%arg0: i32) -> (i32, i32, i32) {
    %c0_i32 = arith.constant 0 : i32
    %c0_i32_0 = arith.constant 0 : i32
    %c0_i32_1 = arith.constant 0 : i32
    return %arg0, %c0_i32, %c0_i32_0 : i32, i32, i32
  }
}

</mosaic_0001>

<bundles_post_ra>
// kernel: tpu_custom_call.1
= control target key start
LH: loop header
LB: loop body
LE: loop exit
PB: predicated region body
PF: predicated region fallthrough
CT: control target
= control target key end

     0   :  { %10 = vsyncpa [#allocation3], 0  ;;  %s450_s0 = inlined_call_operand.hbm [shape: f32[2,4,256], index: 0, kind: input, shape index: {}]   ;;  %s451_s1 = inlined_call_operand.vmem [shape: f32[2,4], index: 1, kind: input, shape index: {}]   ;;  %s452_s2 = inlined_call_operand.vmem [shape: f32[2,1], index: 2, kind: input, shape index: {}]   ;;  %s453_s3 = inlined_call_operand.vmem [shape: f32[4,2], index: 3, kind: input, shape index: {}]   ;;  %s454_s4 = inlined_call_operand.vmem [shape: f32[4,1], index: 4, kind: input, shape index: {}]   ;;  %s455_s5 = inlined_call_operand.hbm [shape: f32[2,4,256], index: 5, kind: output, shape index: {}]  }
   0x1   :  { %11 = vsyncpa [#allocation4], 0  ;;  %s375_s18 = smov [#allocation2]  }
   0x2   :  { %s17_s19 = sshll.u32 %s375_s18, 4  ;;  %s18_s19 = int_to_ptr.vmem [resolvable:$true] %s17_s19 }
   0x3   :  { %s339_s20 = scalar_lea.vmem %s18_s19, 256  ;;  %p344_p1 = scmp.lt.s32.totalorder %s18_s19, %s18_s19 }
   0x4   :  { %p340_p0 = scmp.ne.s32.totalorder %s18_s19, %s339_s20  ;;  %p345_p2 = scmp.lt.s32.totalorder %s339_s20, %s339_s20 }
   0x6   :  { %p346_p3 = por %p345_p2, %p344_p1 }
   0x8   :  { %p347_p4 = pnand %p346_p3, %p340_p0 }
   0xa   :  { %350 = shalt.err (!%p347_p4)
}
   0xb   :  { %s376_s21 = smov 128   ;;  %s377_s22 = smov 8  }
   0xc   :  { %23 = dma.hbm_to_vmem [thread:$0]  %s450_s0, 256, %s18_s19, [#allocation3], %s376_s21, %s376_s21, %s377_s22  }
   0xd   :  { %371 = dma.done.wait [#allocation3], 256  }
   0xe   :  { %372 = vsyncadd [#allocation3], 4294967040  ;;  %vm43_vm0 = vcmask 1043456   ;;  %v420_v0 = vld [vmem:[#allocation2] sm:$0xff]  ;;  %v422_v1 = vld [vmem:[#allocation2 + $0x8] sm:$0xff]  ;;  %v378_v10 = vmov 0.0   ;;  %v65_v14 = vlaneseq }
   0xf   :  { %v39_v2 = vcombine.high %v420_v0, %v420_v0  ;;  %v44_v3 = vsel %vm43_vm0, %v420_v0, 0.0  ;;  %v40_v4 = vcombine.high %v422_v1, %v422_v1  ;;  %v49_v6 = vsel %vm43_vm0, %v422_v1, 0.0  ;;  %302 = vmatprep.subr.mxu0 %v378_v10  ;;  %307 = vmatprep.subr.mxu1 %v378_v10  ;;  %v57_v11 = vld [vmem:[%s452_s2] sm:$0x3] }
  0x10   :  { %vm379_vm1 = vmmov 0   ;;  %v380_v12 = vmov 0   ;;  %v155_v13 = vld [vmem:[%s454_s4] sm:$0xf]  ;;  %v66_v15 = vand.u32 127, %v65_v14  ;;  %v68_v16 = vshrl.u32 %v65_v14, 7 }
  0x11   :  { %v45_v5 = vsel %vm43_vm0, %v39_v2, 0.0  ;;  %v50_v7 = vsel %vm43_vm0, %v40_v4, 0.0  ;;  %304 = vmatprep.mubr.msk.f32.mxu0 %vm379_vm1, %v378_v10  ;;  %309 = vmatprep.mubr.msk.f32.mxu1 %vm379_vm1, %v378_v10  ;;  %vm75_vm2 = vcmask 1041409   ;;  %vm77_vm3 = vcmask 31744   ;;  %v56_v25 = vld [vmem:[%s451_s1] sm:$0x3] }
  0x12   :  { %v46_v8 = vadd.f32 %v45_v5, %v44_v3  ;;  %v51_v9 = vadd.f32 %v50_v7, %v49_v6  ;;  %321 = vset.pattern.permute.xlu1 %v380_v12  ;;  %322 = vset.pattern.permute.xlu0 %v380_v12  ;;  %v69_v18 = vsub.s32 %v66_v15, %v68_v16  ;;  %vm165_vm4 = vcmask 1041408   ;;  %v154_v31 = vld [vmem:[%s453_s3] sm:$0xf]  ;;  %s383_s1 = smov [#allocation5]  }
  0x13   :  { %60 = vperm.xlu1 %321, %v57_v11   ;;  %vm161_vm5 = vcmask 15360   ;;  %v381_v32 = vmov 1   ;;  %v382_v41 = vmov 839922192   ;;  %s281_s3 = sshll.u32 %s383_s1, 4  ;;  %s282_s3 = int_to_ptr.vmem [resolvable:$true] %s281_s3 }
  0x14   :  { %47 = vadd.xlane.f32.xlu0 %v46_v8  ;;  %v251_v42 = vunpack.c.l.s4 %v382_v41  ;;  %s351_s30 = scalar_lea.vmem %s282_s3, 256  ;;  %p356_p6 = scmp.lt.s32.totalorder %s282_s3, %s282_s3 }
  0x15   :  { %p352_p5 = scmp.ne.s32.totalorder %s282_s3, %s351_s30  ;;  %p357_p7 = scmp.lt.s32.totalorder %s351_s30, %s351_s30 }
  0x16   :  { %v252_v43 = vunpack.c.0.s8 %v251_v42 }
  0x17   :  { %158 = vperm.xlu1 %321, %v155_v13   ;;  %p358_p8 = por %p357_p7, %p356_p6 }
  0x18   :  { %52 = vadd.xlane.f32.xlu0 %v51_v9  ;;  %v255_v44 = vsub.s32 %v252_v43, %v68_v16 }
  0x19   :  { %p359_p9 = pnand %p358_p8, %p352_p5 }
  0x1b   :  { %323 = vset.pattern.permute.xlu1 %v381_v32 }
  0x8e   :  { %v61_v26 = vpop.permute.xlu1 %60 }
  0x92   :  { %v159_v33 = vpop.permute.xlu1 %158 }
  0x9d   :  { %v48_v17 = vpop.xlane.xlu0 %47 }
  0x9e   :  { %v54_v19 = vmul.f32 0.00390625, %v48_v17 }
  0xa0   :  { %v70_v22 = vrot.slane %v54_v19, %v69_v18 }
  0xa1   :  { %v53_v20 = vpop.xlane.xlu0 %52 }
  0xa2   :  { %v55_v21 = vmul.f32 0.00390625, %v53_v20 }
  0xa4   :  { %v74_v23 = vrot.slane %v55_v21, %v69_v18 }
  0xa6   :  { %v76_v24 = vsel %vm75_vm2, %v74_v23, %v70_v22 }
  0xa7   :  { %303 = vmatpush3.xpose.msk.msra.mxu0 %vm77_vm3, %v76_v24 }
  0xaa   :  { %305 = vmatmul.mubr.msk.f32.vlgmr.msra.gmra.mxu0 %vm77_vm3, %v56_v25 }
 0x16a   :  { %v149_v27 = vpop.f32.mrf.mxu0 }
 0x16b   :  { %v150_v28 = vadd.f32 %v149_v27, %v61_v26 }
 0x16c   :  { %v306_v29 = vpop.f32.mrf.mxu0 }
 0x16d   :  { %v153_v30 = vmax.f32 %v150_v28, 0.0 }
 0x16f   :  { %308 = vmatpush3.msk.msra.mxu1 %vm165_vm4, %v153_v30 }
 0x170   :  { %310 = vmatmul.mubr.msk.f32.vlgmr.msra.gmra.mxu1 %vm161_vm5, %v154_v31 }
 0x230   :  { %v235_v34 = vpop.f32.mrf.mxu1 }
 0x231   :  { %v236_v35 = vadd.f32 %v235_v34, %v159_v33 }
 0x232   :  { %v311_v36 = vpop.f32.mrf.mxu1 }
 0x233   :  { %v297_v37 = vmul.f32 -1.442695, %v236_v35 }
 0x235   :  { %327 = vpow2.f32 %v297_v37 }
 0x242   :  { %v328_v38 = vpop.eup %327 }
 0x243   :  { %v242_v39 = vadd.f32 1.0, %v328_v38 }
 0x245   :  { %329 = vrcp.f32 %v242_v39 }
 0x252   :  { %v330_v40 = vpop.eup %329 }
 0x253   :  { %263 = vperm.xlu1 %323, %v330_v40   ;;  %248 = vperm.xlu0 %322, %v330_v40  }
 0x257   :  { %324 = vset.pattern.permute.xlu0 %v381_v32 }
 0x2ce   :  { %v264_v45 = vpop.permute.xlu1 %263  ;;  %v249_v46 = vpop.permute.xlu0 %248 }
 0x2cf   :  { %v271_v47 = vrot.slane %v264_v45, %v255_v44  ;;  %v256_v48 = vrot.slane %v249_v46, %v255_v44 }
 0x2d1   :  { %v273_v49 = vmul.f32 %v271_v47, %v422_v1  ;;  %v258_v50 = vmul.f32 %v256_v48, %v420_v0 }
 0x2d3   :  { %275 = vst [vmem:[#allocation5 + $0x8] sm:$0xff] %v273_v49  ;;  %259 = vst [vmem:[#allocation5] sm:$0xff] %v258_v50 }
 0x2d4   :  { %362 = shalt.err (!%p359_p9)
}
 0x2d5   :  { %287 = dma.vmem_to_hbm [thread:$0]  %s282_s3, 256, %s455_s5, [#allocation4], %s376_s21, %s376_s21, %s377_s22  }
 0x2d6   :  { %373 = dma.done.wait [#allocation4], 256  }
 0x2d7   :  { %374 = vsyncadd [#allocation4], 4294967040 }
 0x2d8   :  { %291 = vsyncpa [#allocation3], 1 }
 0x2d9   :  { %292 = vsyncpa [#allocation4], 1 }

</bundles_post_ra>
